<compile_context>
chip_gen: v5e
topology: v5e:2x2
jax: 0.10.0
libtpu: 0.0.40
codegen_flags: <defaults>
</compile_context>

<pallas_src>
import functools

import jax
import jax.numpy as jnp
from jax.experimental import pallas as pl
from jax.experimental.pallas import tpu as pltpu


def _round_up(x, m):
    return ((x + m - 1) // m) * m


def fused_gcn_kernel(a_ref, h_ref, w_ref, b_ref, o_ref, h_scr, x_scr,
                     *, num_layers, tile_m):
    """Fused GCN stack.

    grid = (num_layers, num_row_tiles); per step (l, r):
      r == 0 : x_scr <- H_prev @ W_l + b_l   (H_prev = h_ref for l == 0, else h_scr)
      all r  : y = A[row tile r] @ x_scr
               l <  L-1 : h_scr[rows r] = relu(y)   (input of the next layer)
               l == L-1 : o_ref[rows r] = y
    """
    l = pl.program_id(0)
    r = pl.program_id(1)
    last = num_layers - 1

    # Linear part of the layer, computed once per layer (first row tile only).
    @pl.when(jnp.logical_and(r == 0, l == 0))
    def _():
        x_scr[...] = (jnp.dot(h_ref[...], w_ref[0],
                              preferred_element_type=jnp.float32) + b_ref[0])

    @pl.when(jnp.logical_and(r == 0, l > 0))
    def _():
        x_scr[...] = (jnp.dot(h_scr[...], w_ref[0],
                              preferred_element_type=jnp.float32) + b_ref[0])

    # Graph propagation for this row tile: (tile_m, N_pad) @ (N_pad, Fp).
    y = jnp.dot(a_ref[...], x_scr[...], preferred_element_type=jnp.float32)

    row0 = pl.multiple_of(r * tile_m, tile_m)

    @pl.when(l < last)
    def _():
        # ReLU AFTER the A matmul (matches PyTorch relu(A @ lin(H))).
        # Dropout is identity in eval mode.
        h_scr[pl.ds(row0, tile_m), :] = jnp.maximum(y, 0.0)

    @pl.when(l == last)
    def _():
        o_ref[pl.ds(row0, tile_m), :] = y.astype(o_ref.dtype)


def gcn_forward(a, h, params, *, tile_m=None):
    """Run the whole GCN stack in one pallas_call.

    params = [(W_t, b), ...] with W_t of shape (f_in, f_out) (pre-transposed
    nn.Linear weight) and b of shape (1, f_out)."""
    n = a.shape[0]
    in_size = h.shape[1]
    num_layers = len(params)
    feat_dims = [in_size] + [w.shape[1] for (w, _) in params]
    out_size = feat_dims[-1]

    # Lane-dense feature padding (multiple of 128), shared by every layer so the
    # weights can be stacked into a single (L, Fp, Fp) operand.
    fp = _round_up(max(feat_dims), 128)

    # Row tile: multiple of 8 (sublane), capped at 256 (v6e/v7x native MXU tile).
    # Note: re-derive a smaller tile_m on v7x if VMEM-bound (64 MiB physical VMEM).
    if tile_m is None:
        tile_m = min(_round_up(n, 8), 256)
    n_pad = _round_up(n, tile_m)
    num_row_tiles = n_pad // tile_m

    f32 = jnp.float32
    a_p = jnp.zeros((n_pad, n_pad), f32).at[:n, :n].set(a.astype(f32))
    h_p = jnp.zeros((n_pad, fp), f32).at[:n, :in_size].set(h.astype(f32))
    w_all = jnp.zeros((num_layers, fp, fp), f32)
    b_all = jnp.zeros((num_layers, 1, fp), f32)
    for i, (w_t, bias) in enumerate(params):
        fin, fout = w_t.shape
        w_all = w_all.at[i, :fin, :fout].set(w_t.astype(f32))
        b_all = b_all.at[i, 0, :fout].set(bias.reshape(-1).astype(f32))

    kernel = functools.partial(fused_gcn_kernel, num_layers=num_layers,
                               tile_m=tile_m)

    # Advisory cost for XLA's scheduler around the custom call.
    flops = num_layers * (2 * n_pad * fp * fp + 2 * n_pad * n_pad * fp)
    bytes_accessed = 4 * (num_layers * a_p.size + h_p.size + w_all.size
                          + b_all.size + n_pad * fp)
    cost = pl.CostEstimate(flops=flops, transcendentals=0,
                           bytes_accessed=bytes_accessed)

    # VMEM budget: double-buffered A row tiles + H + per-layer W/b + resident
    # output + two (n_pad, fp) scratches, with headroom.
    vmem_est = 4 * (2 * tile_m * n_pad + 2 * n_pad * fp + 2 * fp * fp + 2 * fp
                    + n_pad * fp + 2 * n_pad * fp)
    vmem_limit = int(min(96 * 1024 * 1024, max(32 * 1024 * 1024, 2 * vmem_est)))

    out_p = pl.pallas_call(
        kernel,
        out_shape=jax.ShapeDtypeStruct((n_pad, fp), f32),
        grid_spec=pltpu.PrefetchScalarGridSpec(
            num_scalar_prefetch=0,
            grid=(num_layers, num_row_tiles),
            in_specs=[
                pl.BlockSpec((tile_m, n_pad), lambda l, r: (r, 0)),    # A row tile
                pl.BlockSpec((n_pad, fp),     lambda l, r: (0, 0)),    # H (layer-0 input)
                pl.BlockSpec((1, fp, fp),     lambda l, r: (l, 0, 0)),  # W_l (once/layer)
                pl.BlockSpec((1, 1, fp),      lambda l, r: (l, 0, 0)),  # b_l (once/layer)
            ],
            out_specs=pl.BlockSpec((n_pad, fp), lambda l, r: (0, 0)),  # VMEM-resident out
            scratch_shapes=[
                pltpu.VMEM((n_pad, fp), f32),   # h_scr: previous layer's activations
                pltpu.VMEM((n_pad, fp), f32),   # x_scr: H_prev @ W_l + b_l
            ],
        ),
        compiler_params=pltpu.CompilerParams(
            # Both axes carry sequential dependencies through the scratches
            # (layers chain; row tiles share x_scr), so both must be "arbitrary".
            dimension_semantics=("arbitrary", "arbitrary"),
            vmem_limit_bytes=vmem_limit,
        ),
        cost_estimate=cost,
    )(a_p, h_p, w_all, b_all)

    return out_p[:n, :out_size]


def init_gcn_params(key, in_size, out_size, num_layers, hidden_size):
    """Deterministic params matching nn.Linear default init (U(-1/sqrt(fan_in), +))."""
    if num_layers >= 2:
        dims = [(in_size, hidden_size)]
        dims += [(hidden_size, hidden_size)] * (num_layers - 2)
        dims += [(hidden_size, out_size)]
    else:
        dims = [(in_size, out_size)]
    params = []
    for (fin, fout) in dims:
        key, kw, kb = jax.random.split(key, 3)
        bound = 1.0 / float(fin) ** 0.5
        # PyTorch stores weight as (fout, fin); we keep the transposed (fin, fout) copy.
        w_t = jax.random.uniform(kw, (fin, fout), jnp.float32, -bound, bound)
        b = jax.random.uniform(kb, (1, fout), jnp.float32, -bound, bound)
        params.append((w_t, b))
    return params


def gcn_reference(a, h, params):
    """Pure-JAX reference mirroring the PyTorch forward (eval mode)."""
    for (w_t, b) in params[:-1]:
        h = jnp.maximum(a @ (h @ w_t + b), 0.0)
    w_t, b = params[-1]
    return a @ (h @ w_t + b)


if __name__ == "__main__":
    # Small shapes: N=8 nodes, in_size=16, hidden=32, out_size=4, num_layers=3
    N, IN_SIZE, HIDDEN, OUT_SIZE, NUM_LAYERS = 8, 16, 32, 4, 3
    DROPOUT = 0.5  # inactive: eval mode

    key = jax.random.PRNGKey(0)
    k_a, k_h, k_p = jax.random.split(key, 3)

    A = jax.random.uniform(k_a, (N, N), jnp.float32)          # dense adjacency
    H = jax.random.normal(k_h, (N, IN_SIZE), jnp.float32)     # node features
    params = init_gcn_params(k_p, IN_SIZE, OUT_SIZE, NUM_LAYERS, HIDDEN)

    out = jax.block_until_ready(gcn_forward(A, H, params))
    ref = gcn_reference(A, H, params)

    assert out.shape == (N, OUT_SIZE)
    assert jnp.allclose(out, ref, atol=1e-4, rtol=1e-4), "mismatch vs reference"

    print("KERNEL_OK")
</pallas_src>

<mosaic_0001>
module attributes {stable_mosaic.version = 11 : i64} {
  func.func @fused_gcn_kernel(%arg0: i32, %arg1: i32, %arg2: memref<8x8xf32, #tpu.memory_space<vmem>>, %arg3: memref<8x128xf32, #tpu.memory_space<vmem>>, %arg4: memref<1x128x128xf32, #tpu.memory_space<vmem>>, %arg5: memref<1x1x128xf32, #tpu.memory_space<vmem>>, %arg6: memref<8x128xf32, #tpu.memory_space<vmem>>, %arg7: memref<8x128xf32, #tpu.memory_space<vmem>>, %arg8: memref<8x128xf32, #tpu.memory_space<vmem>>) attributes {dimension_semantics = [#tpu.dimension_semantics<arbitrary>, #tpu.dimension_semantics<arbitrary>], iteration_bounds = array<i64: 3, 1>, scalar_prefetch = 0 : i64, scratch_operands = 2 : i64, tpu.core_type = #tpu.core_type<tc>, window_params = [{transform_indices = @transform_0, window_bounds = array<i64: 8, 8>}, {pipeline_mode = #tpu.pipeline_mode<synchronous>, transform_indices = @transform_1, window_bounds = array<i64: 8, 128>}, {transform_indices = @transform_2, window_bounds = array<i64: 1, 128, 128>}, {transform_indices = @transform_3, window_bounds = array<i64: 1, 1, 128>}, {pipeline_mode = #tpu.pipeline_mode<synchronous>, transform_indices = @transform_4, window_bounds = array<i64: 8, 128>}]} {
    %c0_i32 = arith.constant 0 : i32
    %0 = arith.cmpi eq, %arg1, %c0_i32 : i32
    %c0_i32_0 = arith.constant 0 : i32
    %1 = arith.cmpi eq, %arg0, %c0_i32_0 : i32
    %2 = arith.andi %0, %1 : i1
    %3 = arith.extui %2 : i1 to i32
    %c0_i32_1 = arith.constant 0 : i32
    %4 = arith.cmpi ne, %3, %c0_i32_1 : i32
    scf.if %4 {
      %c0_11 = arith.constant 0 : index
      %c0_12 = arith.constant 0 : index
      %21 = vector.load %arg3[%c0_11, %c0_12] : memref<8x128xf32, #tpu.memory_space<vmem>>, vector<8x128xf32>
      %c0_13 = arith.constant 0 : index
      %c0_14 = arith.constant 0 : index
      %c0_15 = arith.constant 0 : index
      %22 = vector.load %arg4[%c0_13, %c0_14, %c0_15] : memref<1x128x128xf32, #tpu.memory_space<vmem>>, vector<1x128x128xf32>
      %23 = vector.shape_cast %22 : vector<1x128x128xf32> to vector<128x128xf32>
      %cst_16 = arith.constant dense<0.000000e+00> : vector<8x128xf32>
      %24 = tpu.matmul %21, %23, %cst_16 {dimension_numbers = #tpu.dot_dimension_numbers<[1], [0], [0], [1], [0, 0, 1, 1], [], []>} : vector<8x128xf32>, vector<128x128xf32>, vector<8x128xf32> -> vector<8x128xf32>
      %c0_17 = arith.constant 0 : index
      %c0_18 = arith.constant 0 : index
      %c0_19 = arith.constant 0 : index
      %25 = vector.load %arg5[%c0_17, %c0_18, %c0_19] : memref<1x1x128xf32, #tpu.memory_space<vmem>>, vector<1x1x128xf32>
      %26 = vector.shape_cast %25 : vector<1x1x128xf32> to vector<1x128xf32>
      %27 = vector.broadcast %26 : vector<1x128xf32> to vector<8x128xf32>
      %28 = arith.addf %24, %27 : vector<8x128xf32>
      %c0_20 = arith.constant 0 : index
      %c0_21 = arith.constant 0 : index
      %29 = vector.load %arg8[%c0_20, %c0_21] : memref<8x128xf32, #tpu.memory_space<vmem>>, vector<8x128xf32>
      tpu.vector_store %arg8[%c0_20, %c0_21], %28 {strides = array<i32>} : memref<8x128xf32, #tpu.memory_space<vmem>>, vector<8x128xf32>,
    } else {
    }
    %c0_i32_2 = arith.constant 0 : i32
    %5 = arith.cmpi eq, %arg1, %c0_i32_2 : i32
    %c0_i32_3 = arith.constant 0 : i32
    %6 = arith.cmpi sgt, %arg0, %c0_i32_3 : i32
    %7 = arith.andi %5, %6 : i1
    %8 = arith.extui %7 : i1 to i32
    %c0_i32_4 = arith.constant 0 : i32
    %9 = arith.cmpi ne, %8, %c0_i32_4 : i32
    scf.if %9 {
      %c0_11 = arith.constant 0 : index
      %c0_12 = arith.constant 0 : index
      %21 = vector.load %arg7[%c0_11, %c0_12] : memref<8x128xf32, #tpu.memory_space<vmem>>, vector<8x128xf32>
      %c0_13 = arith.constant 0 : index
      %c0_14 = arith.constant 0 : index
      %c0_15 = arith.constant 0 : index
      %22 = vector.load %arg4[%c0_13, %c0_14, %c0_15] : memref<1x128x128xf32, #tpu.memory_space<vmem>>, vector<1x128x128xf32>
      %23 = vector.shape_cast %22 : vector<1x128x128xf32> to vector<128x128xf32>
      %cst_16 = arith.constant dense<0.000000e+00> : vector<8x128xf32>
      %24 = tpu.matmul %21, %23, %cst_16 {dimension_numbers = #tpu.dot_dimension_numbers<[1], [0], [0], [1], [0, 0, 1, 1], [], []>} : vector<8x128xf32>, vector<128x128xf32>, vector<8x128xf32> -> vector<8x128xf32>
      %c0_17 = arith.constant 0 : index
      %c0_18 = arith.constant 0 : index
      %c0_19 = arith.constant 0 : index
      %25 = vector.load %arg5[%c0_17, %c0_18, %c0_19] : memref<1x1x128xf32, #tpu.memory_space<vmem>>, vector<1x1x128xf32>
      %26 = vector.shape_cast %25 : vector<1x1x128xf32> to vector<1x128xf32>
      %27 = vector.broadcast %26 : vector<1x128xf32> to vector<8x128xf32>
      %28 = arith.addf %24, %27 : vector<8x128xf32>
      %c0_20 = arith.constant 0 : index
      %c0_21 = arith.constant 0 : index
      %29 = vector.load %arg8[%c0_20, %c0_21] : memref<8x128xf32, #tpu.memory_space<vmem>>, vector<8x128xf32>
      tpu.vector_store %arg8[%c0_20, %c0_21], %28 {strides = array<i32>} : memref<8x128xf32, #tpu.memory_space<vmem>>, vector<8x128xf32>,
    } else {
    }
    %c0 = arith.constant 0 : index
    %c0_5 = arith.constant 0 : index
    %10 = vector.load %arg2[%c0, %c0_5] : memref<8x8xf32, #tpu.memory_space<vmem>>, vector<8x8xf32>
    %c0_6 = arith.constant 0 : index
    %c0_7 = arith.constant 0 : index
    %11 = vector.load %arg8[%c0_6, %c0_7] : memref<8x128xf32, #tpu.memory_space<vmem>>, vector<8x128xf32>
    %cst = arith.constant dense<0.000000e+00> : vector<8x128xf32>
    %12 = tpu.matmul %10, %11, %cst {dimension_numbers = #tpu.dot_dimension_numbers<[1], [0], [0], [1], [0, 0, 1, 1], [], []>} : vector<8x8xf32>, vector<8x128xf32>, vector<8x128xf32> -> vector<8x128xf32>
    %c8_i32 = arith.constant 8 : i32
    %13 = arith.muli %arg1, %c8_i32 : i32
    %14 = tpu.assume_multiple %13, 8 : i32
    %c2_i32 = arith.constant 2 : i32
    %15 = arith.cmpi slt, %arg0, %c2_i32 : i32
    %16 = arith.extui %15 : i1 to i32
    %c0_i32_8 = arith.constant 0 : i32
    %17 = arith.cmpi ne, %16, %c0_i32_8 : i32
    scf.if %17 {
      %cst_11 = arith.constant 0.000000e+00 : f32
      %21 = vector.broadcast %cst_11 : f32 to vector<8x128xf32>
      %22 = arith.maximumf %12, %21 : vector<8x128xf32>
      %23 = arith.index_cast %14 : i32 to index
      %c0_12 = arith.constant 0 : index
      %24 = vector.load %arg7[%23, %c0_12] : memref<8x128xf32, #tpu.memory_space<vmem>>, vector<8x128xf32>
      tpu.vector_store %arg7[%23, %c0_12], %22 {strides = array<i32>} : memref<8x128xf32, #tpu.memory_space<vmem>>, vector<8x128xf32>,
    } else {
    }
    %c2_i32_9 = arith.constant 2 : i32
    %18 = arith.cmpi eq, %arg0, %c2_i32_9 : i32
    %19 = arith.extui %18 : i1 to i32
    %c0_i32_10 = arith.constant 0 : i32
    %20 = arith.cmpi ne, %19, %c0_i32_10 : i32
    scf.if %20 {
      %21 = arith.index_cast %14 : i32 to index
      %c0_11 = arith.constant 0 : index
      %22 = vector.load %arg6[%21, %c0_11] : memref<8x128xf32, #tpu.memory_space<vmem>>, vector<8x128xf32>
      tpu.vector_store %arg6[%21, %c0_11], %12 {strides = array<i32>} : memref<8x128xf32, #tpu.memory_space<vmem>>, vector<8x128xf32>,
    } else {
    }
    return
  }
  func.func @transform_0(%arg0: i32, %arg1: i32) -> (i32, i32) {
    %c0_i32 = arith.constant 0 : i32
    %c0_i32_0 = arith.constant 0 : i32
    return %arg1, %c0_i32 : i32, i32
  }
  func.func @transform_1(%arg0: i32, %arg1: i32) -> (i32, i32) {
    %c0_i32 = arith.constant 0 : i32
    %c0_i32_0 = arith.constant 0 : i32
    %c0_i32_1 = arith.constant 0 : i32
    return %c0_i32, %c0_i32_0 : i32, i32
  }
  func.func @transform_2(%arg0: i32, %arg1: i32) -> (i32, i32, i32) {
    %c0_i32 = arith.constant 0 : i32
    %c0_i32_0 = arith.constant 0 : i32
    %c0_i32_1 = arith.constant 0 : i32
    return %arg0, %c0_i32, %c0_i32_0 : i32, i32, i32
  }
  func.func @transform_3(%arg0: i32, %arg1: i32) -> (i32, i32, i32) {
    %c0_i32 = arith.constant 0 : i32
    %c0_i32_0 = arith.constant 0 : i32
    %c0_i32_1 = arith.constant 0 : i32
    return %arg0, %c0_i32, %c0_i32_0 : i32, i32, i32
  }
  func.func @transform_4(%arg0: i32, %arg1: i32) -> (i32, i32) {
    %c0_i32 = arith.constant 0 : i32
    %c0_i32_0 = arith.constant 0 : i32
    %c0_i32_1 = arith.constant 0 : i32
    return %c0_i32, %c0_i32_0 : i32, i32
  }
}

</mosaic_0001>

<bundles_post_ra>
// kernel: tpu_custom_call.1
= control target key start
LH: loop header
LB: loop body
LE: loop exit
PB: predicated region body
PF: predicated region fallthrough
CT: control target
= control target key end

     0   :  { %s1068_s0 = inlined_call_operand.hbm [shape: f32[8,8], index: 0, kind: input, shape index: {}]   ;;  %s1069_s1 = inlined_call_operand.hbm [shape: f32[8,128], index: 1, kind: input, shape index: {}]   ;;  %s1070_s2 = inlined_call_operand.hbm [shape: f32[3,128,128], index: 2, kind: input, shape index: {}]   ;;  %s1071_s3 = inlined_call_operand.hbm [shape: f32[3,1,128], index: 3, kind: input, shape index: {}]   ;;  %s1072_s4 = inlined_call_operand.hbm [shape: f32[8,128], index: 4, kind: output, shape index: {}]  }
   0x1   :  { %1075 = sst [smem:[#allocation18_spill]] %s1068_s0 }
   0x2   :  { %9 = vsyncpa [#allocation5], 0 }
   0x3   :  { %10 = vsyncpa [#allocation8], 0 }
   0x4   :  { %11 = vsyncpa [#allocation6], 0  ;;  %s886_s15 = smov 0   ;;  %s888_s16 = smov 0  }
   0x5   :  { %s890_s17 = smov 0   ;;  %s892_s18 = smov 0  }
   0x6   :  { %s894_s19 = smov 0   ;;  %s896_s20 = smov 0  }
   0x7 LB: > { %1076 = sst [smem:[#allocation16_spill]] %s854_s20  ;;  %s915_s21 = sadd.s32 4294967295, %s854_s20   ;;  %s854_s20 = sphi %s896_s20, %s17_s20   ;;  %s850_s19 = sphi %s894_s19, %s1090_s19   ;;  %s846_s18 = sphi %s892_s18, %s1089_s18   ;;  %s842_s17 = sphi %s890_s17, %s1088_s17   ;;  %s838_s16 = sphi %s888_s16, %s1087_s16   ;;  %s834_s15 = sphi %s886_s15, %s1086_s15  }
   0x8   : > { %s83_s22 = sadd.s32 1, %s842_s17  ;;  %p90_p0 = scmp.ne.s32.totalorder %s842_s17, %s838_s16 }
   0x9   : > { %p91_p1 = scmp.eq.s32.totalorder %s854_s20, 0  ;;  %p96_p2 = scmp.ne.s32.totalorder %s838_s16, %s834_s15 }
   0xa   : > { %p97_p3 = scmp.eq.s32.totalorder %s915_s21, 0  ;;  %p529_p5 = scmp.ge.s32.totalorder %s854_s20, 1 }
   0xb   : > { %p923_p4 = por %p91_p1, %p90_p0  ;;  %p154_p7 = scmp.lt.s32.totalorder %s854_s20, 4 }
   0xc   : > { %p930_p6 = por %p97_p3, %p96_p2  ;;  %s1079_s0 = sld [smem:[#allocation18_spill]] }
   0xd   : > { %p938_p8 = pnand %p529_p5, %p154_p7  ;;  %s856_s29 = smov [#allocation4]  }
   0xe   : > { %s170_s30 = sshll.u32 %s856_s29, 4  ;;  %p584_p10 = scmp.lt.s32.totalorder %s854_s20, 3  ;;  %s171_s30 = int_to_ptr.vmem [resolvable:$true] %s170_s30 }
   0xf   : > { %p568_p9 = pneg %p938_p8  ;;  %s29_s7 = sadd.s32 1, %s850_s19 }
  0x10   : > { %p953_p12 = pnand %p584_p10, %p923_p4  ;;  %p31_p13 = scmp.ge.s32.totalorder %s29_s7, 3 }
  0x11   : > { %p947_p11 = pnand %p568_p9, %p97_p3  ;;  %s193_s8 = sand.u32 1, %s854_s20  }
  0x12   : > { %s168_s27 = sshll.u32 %s1079_s0, 4  ;;  %s195_s9 = sand.u32 1, %s842_s17   ;;  %s169_s27 = int_to_ptr.hbm [resolvable:$true] %s168_s27 }
  0x13   : > { %571 = dma.hbm_to_vmem [thread:$0]  (!%p947_p11), %s169_s27, 128, %s171_s30, [#allocation5]  }
  0x14   : > { %s1092_s7 = smov (%p31_p13, %s29_s7), 0  ;;  %s533_s10 = sshll.u32 %s195_s9, 7 }
  0x15   : > { %1083 = sst [smem:[#allocation17_spill]] %s1092_s7  ;;  %s80_s11 = ssub.s32 %s850_s19, %s1092_s7 }
  0x16   : > { %p81_p0 = scmp.eq.s32.totalorder %s80_s11, 0  ;;  %s549_s12 = sshll.u32 %s850_s19, 7 }
  0x17   : > { %s202_s15 = scalar_lea.hbm %s1070_s2, %s549_s12  ;;  %s197_s23 = scalar_lea.vmem [#allocation9], %s533_s10 }
  0x18   : > { %s205_s25 = sshll.u32 %s197_s23, 4  ;;  %s203_s27 = sshll.u32 %s202_s15, 4  ;;  %s206_s25 = int_to_ptr.vmem [resolvable:$true] %s205_s25  ;;  %s204_s27 = int_to_ptr.hbm [resolvable:$true] %s203_s27 }
  0x19   : > { %s973_s26 = scalar_select %p81_p0, %s842_s17, %s83_s22  }
  0x1a   : > { %s180_s0 = sshll.u32 %s1069_s1, 4  ;;  %s194_s11 = scalar_lea.sflag [#allocation5], %s193_s8  ;;  %s181_s0 = int_to_ptr.hbm [resolvable:$true] %s180_s0 }
  0x1b   : > { %s857_s7 = smov 128   ;;  %s858_s20 = smov 8  }
  0x1c   : > { %578 = dma.hbm_to_vmem [thread:$0]  (!%p953_p12), %s204_s27, 2048, %s206_s25, %s194_s11, %s857_s7, %s857_s7, %s858_s20  }
  0x1d   : > { %s859_s10 = smov [#allocation7]   ;;  %s221_s14 = scalar_lea.hbm %s1071_s3, %s850_s19 }
  0x1e   : > { %s182_s12 = sshll.u32 %s859_s10, 4  ;;  %s223_s15 = sshll.u32 %s221_s14, 4  ;;  %s183_s12 = int_to_ptr.vmem [resolvable:$true] %s182_s12  ;;  %s224_s15 = int_to_ptr.hbm [resolvable:$true] %s223_s15 }
  0x1f   : > { %574 = dma.hbm_to_vmem [thread:$0]  (!%p947_p11), %s181_s0, 128, %s183_s12, [#allocation8]  }
  0x20   : > { %s218_s23 = scalar_lea.vmem [#allocation10], %s195_s9  ;;  %234 = sbr.rel (%p938_p8) target bundleno = 519 (0x207), region = 36 }
  0x21   : > { %s225_s29 = sshll.u32 %s218_s23, 4  ;;  %s226_s29 = int_to_ptr.vmem [resolvable:$true] %s225_s29 }
  0x22   : > { %581 = dma.hbm_to_vmem [thread:$0]  (!%p953_p12), %s224_s15, 16, %s226_s29, %s194_s11  }
  0x25   : > { %817 = dma.done.wait (%p97_p3), [#allocation5], 128  }
  0x26   : > { %819 = vsyncadd (%p97_p3), [#allocation5], 4294967168 }
  0x27   : > { %821 = dma.done.wait (%p97_p3), [#allocation8], 128  }
  0x28   : > { %823 = vsyncadd (%p97_p3), [#allocation8], 4294967168  ;;  %s246_s0 = sand.u32 1, %s915_s21   ;;  %s248_s20 = sand.u32 1, %s838_s16  }
  0x29   : > { %s539_s5 = sshll.u32 %s248_s20, 7  ;;  %s247_s28 = scalar_lea.sflag [#allocation5], %s246_s0 }
  0x2a   : > { %s1000_s6 = scalar_lea.vmem [#allocation9], %s539_s5 }
  0x2b   : > { %825 = dma.done.wait (%p930_p6), %s247_s28, 2064  }
  0x2c   : > { %827 = vsyncadd (%p930_p6), %s247_s28, 4294965232  ;;  %p285_p1 = scmp.eq.s32.totalorder %s846_s18, 0  ;;  %s1007_s7 = scalar_lea.vmem [#allocation10], %s248_s20 }
  0x2d   : > { %v306_v0 = vld [vmem:[%s1000_s6 + $0x78] sm:$0xff] (%p285_p1)  ;;  %v305_v1 = vld [vmem:[%s1000_s6 + $0x70] sm:$0xff] (%p285_p1)  ;;  %v304_v2 = vld [vmem:[%s1000_s6 + $0x68] sm:$0xff] (%p285_p1) }
  0x2e   : > { %289 = sbr.rel (!%p285_p1) target bundleno = 206 (0xce), region = 56  ;;  %311 = vmatpush.msra.mxu0 (%p285_p1), %v306_v0  ;;  %v303_v3 = vld [vmem:[%s1000_s6 + $0x60] sm:$0xff] (%p285_p1)  ;;  %v302_v4 = vld [vmem:[%s1000_s6 + $0x58] sm:$0xff] (%p285_p1)  ;;  %v301_v5 = vld [vmem:[%s1000_s6 + $0x50] sm:$0xff] (%p285_p1) }
  0x2f   : > { %v300_v6 = vld [vmem:[%s1000_s6 + $0x48] sm:$0xff] (%p285_p1)  ;;  %v299_v7 = vld [vmem:[%s1000_s6 + $0x40] sm:$0xff] (%p285_p1)  ;;  %v298_v8 = vld [vmem:[%s1000_s6 + $0x38] sm:$0xff] (%p285_p1) }
  0x30   : > { %312 = vmatpush.msra.mxu0 (%p285_p1), %v305_v1  ;;  %v297_v9 = vld [vmem:[%s1000_s6 + $0x30] sm:$0xff] (%p285_p1)  ;;  %v296_v10 = vld [vmem:[%s1000_s6 + $0x28] sm:$0xff] (%p285_p1)  ;;  %v295_v11 = vld [vmem:[%s1000_s6 + $0x20] sm:$0xff] (%p285_p1) }
  0x31   : > { %v294_v12 = vld [vmem:[%s1000_s6 + $0x18] sm:$0xff] (%p285_p1)  ;;  %v293_v13 = vld [vmem:[%s1000_s6 + $0x10] sm:$0xff] (%p285_p1)  ;;  %v292_v14 = vld [vmem:[%s1000_s6 + $0x8] sm:$0xff] (%p285_p1) }
  0x32   : > { %313 = vmatpush.msra.mxu0 (%p285_p1), %v304_v2  ;;  %v291_v15 = vld [vmem:[%s1000_s6] sm:$0xff] (%p285_p1)  ;;  %v290_v16 = vld [vmem:[#allocation7] sm:$0xff] (%p285_p1) }
  0x33   : > { %v642_v17 = vld [vmem:[%s1007_s7] ss:$0 sm:$0xff] }
  0x34   : > { %314 = vmatpush.msra.mxu0 %v303_v3 }
  0x36   : > { %315 = vmatpush.msra.mxu0 %v302_v4 }
  0x38   : > { %316 = vmatpush.msra.mxu0 %v301_v5 }
  0x3a   : > { %317 = vmatpush.msra.mxu0 %v300_v6 }
  0x3c   : > { %318 = vmatpush.msra.mxu0 %v299_v7 }
  0x3e   : > { %319 = vmatpush.msra.mxu0 %v298_v8 }
  0x40   : > { %320 = vmatpush.msra.mxu0 %v297_v9 }
  0x42   : > { %321 = vmatpush.msra.mxu0 %v296_v10 }
  0x44   : > { %322 = vmatpush.msra.mxu0 %v295_v11 }
  0x46   : > { %323 = vmatpush.msra.mxu0 %v294_v12 }
  0x48   : > { %324 = vmatpush.msra.mxu0 %v293_v13 }
  0x4a   : > { %325 = vmatpush.msra.mxu0 %v292_v14 }
  0x4c   : > { %326 = vmatpush.msra.mxu0 %v291_v15 }
  0x4d   : > { %327 = vmatmul.f32.vlgmr.msra.gmra.mxu0 %v290_v16 }
  0xca   : > { %v328_v18 = vpop.f32.mrf.mxu0 }
  0xcb   : > { %v329_v19 = vadd.f32 %v642_v17, %v328_v18 }
  0xcd   : > { %331 = vst [vmem:[#allocation3] sm:$0xff] %v329_v19 }
  0xce PF: > { %p332_p2 = scmp.gt.s32.totalorder %s846_s18, 0 }
  0xcf   : > { %v353_v20 = vld [vmem:[%s1000_s6 + $0x78] sm:$0xff] (%p332_p2)  ;;  %v352_v21 = vld [vmem:[%s1000_s6 + $0x70] sm:$0xff] (%p332_p2)  ;;  %v351_v22 = vld [vmem:[%s1000_s6 + $0x68] sm:$0xff] (%p332_p2) }
  0xd0   : > { %336 = sbr.rel (!%p332_p2) target bundleno = 368 (0x170), region = 60  ;;  %358 = vmatpush.msra.mxu0 (%p332_p2), %v353_v20  ;;  %v350_v23 = vld [vmem:[%s1000_s6 + $0x60] sm:$0xff] (%p332_p2)  ;;  %v349_v24 = vld [vmem:[%s1000_s6 + $0x58] sm:$0xff] (%p332_p2)  ;;  %v348_v25 = vld [vmem:[%s1000_s6 + $0x50] sm:$0xff] (%p332_p2) }
  0xd1   : > { %v347_v26 = vld [vmem:[%s1000_s6 + $0x48] sm:$0xff] (%p332_p2)  ;;  %v346_v27 = vld [vmem:[%s1000_s6 + $0x40] sm:$0xff] (%p332_p2)  ;;  %v345_v28 = vld [vmem:[%s1000_s6 + $0x38] sm:$0xff] (%p332_p2) }
  0xd2   : > { %359 = vmatpush.msra.mxu0 (%p332_p2), %v352_v21  ;;  %v344_v29 = vld [vmem:[%s1000_s6 + $0x30] sm:$0xff] (%p332_p2)  ;;  %v343_v30 = vld [vmem:[%s1000_s6 + $0x28] sm:$0xff] (%p332_p2)  ;;  %v342_v31 = vld [vmem:[%s1000_s6 + $0x20] sm:$0xff] (%p332_p2) }
  0xd3   : > { %v341_v32 = vld [vmem:[%s1000_s6 + $0x18] sm:$0xff] (%p332_p2)  ;;  %v340_v33 = vld [vmem:[%s1000_s6 + $0x10] sm:$0xff] (%p332_p2)  ;;  %v339_v34 = vld [vmem:[%s1000_s6 + $0x8] sm:$0xff] (%p332_p2) }
  0xd4   : > { %360 = vmatpush.msra.mxu0 (%p332_p2), %v351_v22  ;;  %v338_v35 = vld [vmem:[%s1000_s6] sm:$0xff] (%p332_p2) }
  0xd5   : > { %v337_v36 = vld [vmem:[#allocation2] sm:$0xff] }
  0xd6   : > { %361 = vmatpush.msra.mxu0 %v350_v23  ;;  %v643_v37 = vld [vmem:[%s1007_s7] ss:$0 sm:$0xff] }
  0xd8   : > { %362 = vmatpush.msra.mxu0 %v349_v24 }
  0xda   : > { %363 = vmatpush.msra.mxu0 %v348_v25 }
  0xdc   : > { %364 = vmatpush.msra.mxu0 %v347_v26 }
  0xde   : > { %365 = vmatpush.msra.mxu0 %v346_v27 }
  0xe0   : > { %366 = vmatpush.msra.mxu0 %v345_v28 }
  0xe2   : > { %367 = vmatpush.msra.mxu0 %v344_v29 }
  0xe4   : > { %368 = vmatpush.msra.mxu0 %v343_v30 }
  0xe6   : > { %369 = vmatpush.msra.mxu0 %v342_v31 }
  0xe8   : > { %370 = vmatpush.msra.mxu0 %v341_v32 }
  0xea   : > { %371 = vmatpush.msra.mxu0 %v340_v33 }
  0xec   : > { %372 = vmatpush.msra.mxu0 %v339_v34 }
  0xee   : > { %373 = vmatpush.msra.mxu0 %v338_v35 }
  0xef   : > { %374 = vmatmul.f32.vlgmr.msra.gmra.mxu0 %v337_v36 }
 0x16c   : > { %v375_v38 = vpop.f32.mrf.mxu0 }
 0x16d   : > { %v376_v39 = vadd.f32 %v643_v37, %v375_v38 }
 0x16f   : > { %378 = vst [vmem:[#allocation3] sm:$0xff] %v376_v39 }
 0x170 PF: > { %v379_v41 = vld [vmem:[#allocation4] sm:$0xff]  ;;  %vm381_vm0 = vcmask 64512   ;;  %p543_p3 = scmp.ge.s32.totalorder %s846_s18, 2 }
 0x176   : > { %v380_v40 = vld [vmem:[#allocation3] sm:$0xff] }
 0x177   : > { %400 = vmatpush.msra.mxu0 %v380_v40 }
 0x178   : > { %542 = vmatmul.msk.f32.vlgmr.msra.gmra.mxu0 %vm381_vm0, %v379_v41 }
 0x1f1   : > { %409 = sbr.rel (%p543_p3) target bundleno = 505 (0x1f9), region = 64 }
 0x1f5   : > { %v402_v42 = vpop.f32.mrf.mxu0 }
 0x1f6   : > { %v410_v43 = vmax.f32 %v402_v42, 0.0 }
 0x1f8   : > { %412 = vst [vmem:[#allocation2] sm:$0xff] %v410_v43 }
 0x1f9 PF: > { %p544_p4 = scmp.ne.s32.totalorder %s846_s18, 2 }
 0x1fb   : > { %416 = sbr.rel (%p544_p4) target bundleno = 513 (0x201), region = 68 }
 0x200   : > { %418 = vst [vmem:[#allocation11] sm:$0xff] %v402_v42 }
 0x201 PF: > { %p587_p5 = scmp.eq.s32.totalorder %s915_s21, 2  ;;  %s427_s9 = sshll.u32 %s1072_s4, 4  ;;  %s428_s9 = int_to_ptr.hbm [resolvable:$true] %s427_s9 }
 0x202   : > { %s860_s25 = smov [#allocation11]  }
 0x203   : > { %s425_s27 = sshll.u32 %s860_s25, 4  ;;  %s426_s27 = int_to_ptr.vmem [resolvable:$true] %s425_s27 }
 0x204   : > { %565 = dma.vmem_to_hbm [thread:$0]  (%p587_p5), %s426_s27, 128, %s428_s9, [#allocation6]  }
 0x205   : > { %829 = dma.done.wait (%p587_p5), [#allocation6], 128  }
 0x206   : > { %831 = vsyncadd (%p587_p5), [#allocation6], 4294967168 }
 0x207 PF: > { %s1084_s30 = sld [smem:[#allocation16_spill]]  ;;  %s1086_s15 = smov %s838_s16 }
 0x208   : > { %s1085_s21 = sld [smem:[#allocation17_spill]]  ;;  %s1087_s16 = smov %s842_s17 }
 0x209   : > { %s1088_s17 = smov %s973_s26  ;;  %s1089_s18 = smov %s850_s19 }
 0x20d   : > { %s17_s20 = sadd.s32 1, %s1084_s30  }
 0x20e   : > { %p14_p6 = scmp.ge.s32.totalorder %s17_s20, 5   ;;  %s1090_s19 = smov %s1085_s21 }
 0x210   :  { %16 = sbr.rel (!%p14_p6) target bundleno = 7 (0x7), region = 110 }
 0x215   :  { %441 = vsyncpa [#allocation5], 1 }
 0x216   :  { %443 = vsyncpa [#allocation5 + $0x1], 1 }
 0x217   :  { %444 = vsyncpa [#allocation8], 1 }
 0x218   :  { %445 = vsyncpa [#allocation6], 1 }
 0x219   :  { %447 = vsyncpa [#allocation6 + $0x1], 1 }

</bundles_post_ra>
